<compile_context>
chip_gen: v6e
topology: v6e:2x2x1
jax: 0.10.0
libtpu: 0.0.40
codegen_flags: <defaults>
</compile_context>

<pallas_src>
import jax
import jax.numpy as jnp
from jax.experimental import pallas as pl
from jax.experimental.pallas import tpu as pltpu

IN_F = 80                      # input features
H1 = 100                       # hidden layer 1 width (padded to 128 in-kernel)
H2 = 50                        # hidden layer 2 width (padded to 128 in-kernel)
HEAD_DIMS = (7, 3, 7, 7)       # turn, fire, pitch, accel
HEAD_TOTAL = sum(HEAD_DIMS)    # 24
LANE = 128


def _flightnet_kernel(x_ref, w1_ref, b1_ref, w2_ref, b2_ref, wh_ref, out_ref):
    # Layer 1: (TB, 80) @ (80, 128) + (1, 128), ReLU.  Padded lanes stay 0.
    h = jnp.dot(x_ref[...], w1_ref[...], preferred_element_type=jnp.float32)
    h = jnp.maximum(h + b1_ref[...], 0.0)
    # Layer 2: (TB, 128) @ (128, 128) + (1, 128), ReLU.
    h = jnp.dot(h, w2_ref[...], preferred_element_type=jnp.float32)
    h = jnp.maximum(h + b2_ref[...], 0.0)
    # Fused bias-free heads in one MXU pass; store only the 24 real logits.
    out_ref[...] = jnp.dot(h, wh_ref[...], preferred_element_type=jnp.float32)


def prepare_params(params):
    """One-time prep: transpose to (in, out), fuse heads, zero-pad contraction
    dims to 128 lanes.  Hoisted out of the per-call path."""
    def pad_to(a, shape):
        return jnp.pad(a, [(0, t - s) for s, t in zip(a.shape, shape)])

    w1 = pad_to(params["hidden_w"].T, (IN_F, LANE))           # (80, 128)
    b1 = pad_to(params["hidden_b"][None, :], (1, LANE))       # (1, 128), pad = 0
    w2 = pad_to(params["hidden1_w"].T, (LANE, LANE))          # (128, 128)
    b2 = pad_to(params["hidden1_b"][None, :], (1, LANE))      # (1, 128), pad = 0
    wh = jnp.concatenate(
        [params["turn_w"].T, params["fire_w"].T,
         params["pitch_w"].T, params["accel_w"].T], axis=1)   # (50, 24)
    wh = pad_to(wh, (LANE, HEAD_TOTAL))                       # (128, 24)
    return {"w1": w1, "b1": b1, "w2": w2, "b2": b2, "wh": wh}


def _round_up(n, m):
    return ((n + m - 1) // m) * m


def _choose_tb(B):
    """Batch tile size.

    Big tiles amortize the ~0.35 us per-grid-step pipeline overhead (cap 1024;
    per-step double-buffered VMEM is only a few MiB, well under the scoped
    limit on every generation).  For B > 16 the batch is split into >= 2 tiles
    so the "parallel" batch axis can be sharded across v7x's two TensorCores.
    """
    CAP = 1024
    if B <= 16:
        return max(8, _round_up(B, 8))
    return min(CAP, _round_up((B + 1) // 2, 8))


def flightnet_forward(x, prepped):
    """x: (B, 80) float32. prepped: output of prepare_params()."""
    B = x.shape[0]
    TB = _choose_tb(B)
    grid = (pl.cdiv(B, TB),)   # ragged last block: Pallas masks OOB output rows

    flops = 2 * B * (IN_F * H1 + H1 * H2 + H2 * HEAD_TOTAL)
    bytes_accessed = 4 * (B * IN_F + B * HEAD_TOTAL
                          + IN_F * LANE + LANE * LANE + LANE * HEAD_TOTAL
                          + 2 * LANE)
    cost = pl.CostEstimate(flops=flops, transcendentals=0,
                           bytes_accessed=bytes_accessed)

    out = pl.pallas_call(
        _flightnet_kernel,
        out_shape=jax.ShapeDtypeStruct((B, HEAD_TOTAL), jnp.float32),
        grid=grid,
        in_specs=[
            pl.BlockSpec((TB, IN_F), lambda i: (i, 0)),          # x (batch-tiled)
            pl.BlockSpec((IN_F, LANE), lambda i: (0, 0)),        # w1 (resident)
            pl.BlockSpec((1, LANE), lambda i: (0, 0)),           # b1
            pl.BlockSpec((LANE, LANE), lambda i: (0, 0)),        # w2
            pl.BlockSpec((1, LANE), lambda i: (0, 0)),           # b2
            pl.BlockSpec((LANE, HEAD_TOTAL), lambda i: (0, 0)),  # fused head W
        ],
        out_specs=pl.BlockSpec((TB, HEAD_TOTAL), lambda i: (i, 0)),
        compiler_params=pltpu.CompilerParams(
            dimension_semantics=("parallel",)),                  # 2 TCs on v7x
        cost_estimate=cost,
    )(x, prepped["w1"], prepped["b1"], prepped["w2"],
      prepped["b2"], prepped["wh"])

    return {
        "turn_p": out[:, 0:7],
        "fire_p": out[:, 7:10],
        "pitch_p": out[:, 10:17],
        "accel_p": out[:, 17:24],
    }


def init_params(key):
    """Deterministic synthetic init; shapes follow nn.Linear (out, in)."""
    ks = jax.random.split(key, 10)

    def linear_w(k, out_f, in_f):
        bound = 1.0 / jnp.sqrt(in_f)
        return jax.random.uniform(k, (out_f, in_f), jnp.float32, -bound, bound)

    def linear_b(k, out_f, in_f):
        bound = 1.0 / jnp.sqrt(in_f)
        return jax.random.uniform(k, (out_f,), jnp.float32, -bound, bound)

    return {
        "hidden_w": linear_w(ks[0], 100, 80),
        "hidden_b": linear_b(ks[1], 100, 80),
        "hidden1_w": linear_w(ks[2], 50, 100),
        "hidden1_b": linear_b(ks[3], 50, 100),
        "turn_w": linear_w(ks[4], 7, 50),
        "fire_w": linear_w(ks[5], 3, 50),
        "pitch_w": linear_w(ks[6], 7, 50),
        "accel_w": linear_w(ks[7], 7, 50),
    }


def _reference_forward(x, params):
    h = jnp.maximum(x @ params["hidden_w"].T + params["hidden_b"], 0.0)
    h = jnp.maximum(h @ params["hidden1_w"].T + params["hidden1_b"], 0.0)
    return {
        "turn_p": h @ params["turn_w"].T,
        "fire_p": h @ params["fire_w"].T,
        "pitch_p": h @ params["pitch_w"].T,
        "accel_p": h @ params["accel_w"].T,
    }


if __name__ == "__main__":
    key = jax.random.PRNGKey(0)
    k_param, k_x = jax.random.split(key)

    params = init_params(k_param)
    prepped = prepare_params(params)   # one-time weight prep (hoisted)

    # Small batch: single tile, exercises the basic path.
    B = 8
    x = jax.random.normal(k_x, (B, IN_F), jnp.float32)
    out = jax.block_until_ready(flightnet_forward(x, prepped))
    ref = _reference_forward(x, params)
    # f32 with default MXU precision on both sides; 1e-4 is comfortably tight.
    for name in ("turn_p", "fire_p", "pitch_p", "accel_p"):
        assert out[name].shape == ref[name].shape, name
        assert jnp.allclose(out[name], ref[name], atol=1e-4, rtol=1e-4), name

    # Ragged batch: exercises the 2-tile grid + masked last block (no jnp.pad).
    B2 = 300
    x2 = jax.random.normal(jax.random.PRNGKey(1), (B2, IN_F), jnp.float32)
    out2 = jax.block_until_ready(flightnet_forward(x2, prepped))
    ref2 = _reference_forward(x2, params)
    for name in ("turn_p", "fire_p", "pitch_p", "accel_p"):
        assert out2[name].shape == ref2[name].shape, name
        assert jnp.allclose(out2[name], ref2[name], atol=1e-4, rtol=1e-4), name

    print("KERNEL_OK")
</pallas_src>

<mosaic_0001>
module attributes {stable_mosaic.version = 11 : i64} {
  func.func @_flightnet_kernel(%arg0: i32, %arg1: memref<8x80xf32, #tpu.memory_space<vmem>>, %arg2: memref<80x128xf32, #tpu.memory_space<vmem>>, %arg3: memref<1x128xf32, #tpu.memory_space<vmem>>, %arg4: memref<128x128xf32, #tpu.memory_space<vmem>>, %arg5: memref<1x128xf32, #tpu.memory_space<vmem>>, %arg6: memref<128x24xf32, #tpu.memory_space<vmem>>, %arg7: memref<8x24xf32, #tpu.memory_space<vmem>>) attributes {dimension_semantics = [#tpu.dimension_semantics<parallel>], iteration_bounds = array<i64: 1>, scalar_prefetch = 0 : i64, scratch_operands = 0 : i64, tpu.core_type = #tpu.core_type<tc>, window_params = [{transform_indices = @transform_0, window_bounds = array<i64: 8, 80>}, {pipeline_mode = #tpu.pipeline_mode<synchronous>, transform_indices = @transform_1, window_bounds = array<i64: 80, 128>}, {pipeline_mode = #tpu.pipeline_mode<synchronous>, transform_indices = @transform_2, window_bounds = array<i64: 1, 128>}, {pipeline_mode = #tpu.pipeline_mode<synchronous>, transform_indices = @transform_3, window_bounds = array<i64: 128, 128>}, {pipeline_mode = #tpu.pipeline_mode<synchronous>, transform_indices = @transform_4, window_bounds = array<i64: 1, 128>}, {pipeline_mode = #tpu.pipeline_mode<synchronous>, transform_indices = @transform_5, window_bounds = array<i64: 128, 24>}, {transform_indices = @transform_6, window_bounds = array<i64: 8, 24>}]} {
    %c0 = arith.constant 0 : index
    %c0_0 = arith.constant 0 : index
    %0 = vector.load %arg1[%c0, %c0_0] : memref<8x80xf32, #tpu.memory_space<vmem>>, vector<8x80xf32>
    %c0_1 = arith.constant 0 : index
    %c0_2 = arith.constant 0 : index
    %1 = vector.load %arg2[%c0_1, %c0_2] : memref<80x128xf32, #tpu.memory_space<vmem>>, vector<80x128xf32>
    %cst = arith.constant dense<0.000000e+00> : vector<8x128xf32>
    %2 = tpu.matmul %0, %1, %cst {dimension_numbers = #tpu.dot_dimension_numbers<[1], [0], [0], [1], [0, 0, 1, 1], [], []>} : vector<8x80xf32>, vector<80x128xf32>, vector<8x128xf32> -> vector<8x128xf32>
    %c0_3 = arith.constant 0 : index
    %c0_4 = arith.constant 0 : index
    %3 = vector.load %arg3[%c0_3, %c0_4] : memref<1x128xf32, #tpu.memory_space<vmem>>, vector<1x128xf32>
    %4 = vector.broadcast %3 : vector<1x128xf32> to vector<8x128xf32>
    %5 = arith.addf %2, %4 : vector<8x128xf32>
    %cst_5 = arith.constant 0.000000e+00 : f32
    %6 = vector.broadcast %cst_5 : f32 to vector<8x128xf32>
    %7 = arith.maximumf %5, %6 : vector<8x128xf32>
    %c0_6 = arith.constant 0 : index
    %c0_7 = arith.constant 0 : index
    %8 = vector.load %arg4[%c0_6, %c0_7] : memref<128x128xf32, #tpu.memory_space<vmem>>, vector<128x128xf32>
    %cst_8 = arith.constant dense<0.000000e+00> : vector<8x128xf32>
    %9 = tpu.matmul %7, %8, %cst_8 {dimension_numbers = #tpu.dot_dimension_numbers<[1], [0], [0], [1], [0, 0, 1, 1], [], []>} : vector<8x128xf32>, vector<128x128xf32>, vector<8x128xf32> -> vector<8x128xf32>
    %c0_9 = arith.constant 0 : index
    %c0_10 = arith.constant 0 : index
    %10 = vector.load %arg5[%c0_9, %c0_10] : memref<1x128xf32, #tpu.memory_space<vmem>>, vector<1x128xf32>
    %11 = vector.broadcast %10 : vector<1x128xf32> to vector<8x128xf32>
    %12 = arith.addf %9, %11 : vector<8x128xf32>
    %cst_11 = arith.constant 0.000000e+00 : f32
    %13 = vector.broadcast %cst_11 : f32 to vector<8x128xf32>
    %14 = arith.maximumf %12, %13 : vector<8x128xf32>
    %c0_12 = arith.constant 0 : index
    %c0_13 = arith.constant 0 : index
    %15 = vector.load %arg6[%c0_12, %c0_13] : memref<128x24xf32, #tpu.memory_space<vmem>>, vector<128x24xf32>
    %cst_14 = arith.constant dense<0.000000e+00> : vector<8x24xf32>
    %16 = tpu.matmul %14, %15, %cst_14 {dimension_numbers = #tpu.dot_dimension_numbers<[1], [0], [0], [1], [0, 0, 1, 1], [], []>} : vector<8x128xf32>, vector<128x24xf32>, vector<8x24xf32> -> vector<8x24xf32>
    %c0_15 = arith.constant 0 : index
    %c0_16 = arith.constant 0 : index
    %17 = vector.load %arg7[%c0_15, %c0_16] : memref<8x24xf32, #tpu.memory_space<vmem>>, vector<8x24xf32>
    tpu.vector_store %arg7[%c0_15, %c0_16], %16 {strides = array<i32>} : memref<8x24xf32, #tpu.memory_space<vmem>>, vector<8x24xf32>,
    return
  }
  func.func @transform_0(%arg0: i32) -> (i32, i32) {
    %c0_i32 = arith.constant 0 : i32
    %c0_i32_0 = arith.constant 0 : i32
    return %arg0, %c0_i32 : i32, i32
  }
  func.func @transform_1(%arg0: i32) -> (i32, i32) {
    %c0_i32 = arith.constant 0 : i32
    %c0_i32_0 = arith.constant 0 : i32
    %c0_i32_1 = arith.constant 0 : i32
    return %c0_i32, %c0_i32_0 : i32, i32
  }
  func.func @transform_2(%arg0: i32) -> (i32, i32) {
    %c0_i32 = arith.constant 0 : i32
    %c0_i32_0 = arith.constant 0 : i32
    %c0_i32_1 = arith.constant 0 : i32
    return %c0_i32, %c0_i32_0 : i32, i32
  }
  func.func @transform_3(%arg0: i32) -> (i32, i32) {
    %c0_i32 = arith.constant 0 : i32
    %c0_i32_0 = arith.constant 0 : i32
    %c0_i32_1 = arith.constant 0 : i32
    return %c0_i32, %c0_i32_0 : i32, i32
  }
  func.func @transform_4(%arg0: i32) -> (i32, i32) {
    %c0_i32 = arith.constant 0 : i32
    %c0_i32_0 = arith.constant 0 : i32
    %c0_i32_1 = arith.constant 0 : i32
    return %c0_i32, %c0_i32_0 : i32, i32
  }
  func.func @transform_5(%arg0: i32) -> (i32, i32) {
    %c0_i32 = arith.constant 0 : i32
    %c0_i32_0 = arith.constant 0 : i32
    %c0_i32_1 = arith.constant 0 : i32
    return %c0_i32, %c0_i32_0 : i32, i32
  }
  func.func @transform_6(%arg0: i32) -> (i32, i32) {
    %c0_i32 = arith.constant 0 : i32
    %c0_i32_0 = arith.constant 0 : i32
    return %arg0, %c0_i32 : i32, i32
  }
}

</mosaic_0001>

<bundles_post_ra>
// kernel: tpu_custom_call.1
= control target key start
LH: loop header
LB: loop body
LE: loop exit
PB: predicated region body
PF: predicated region fallthrough
CT: control target
= control target key end

     0   :  { %11 = vsyncpa [#allocation3], 0  ;;  %s719_s0 = inlined_call_operand.vmem [shape: f32[8,80], index: 0, kind: input, shape index: {}]   ;;  %s720_s1 = inlined_call_operand.hbm [shape: f32[80,128], index: 1, kind: input, shape index: {}]   ;;  %s721_s2 = inlined_call_operand.vmem [shape: f32[1,128], index: 2, kind: input, shape index: {}]   ;;  %s722_s3 = inlined_call_operand.vmem [shape: f32[128,128], index: 3, kind: input, shape index: {}]   ;;  %s723_s4 = inlined_call_operand.vmem [shape: f32[1,128], index: 4, kind: input, shape index: {}]   ;;  %s724_s5 = inlined_call_operand.vmem [shape: f32[128,24], index: 5, kind: input, shape index: {}]   ;;  %s725_s6 = inlined_call_operand.hbm [shape: f32[8,24], index: 6, kind: output, shape index: {}]  }
   0x1   :  { %12 = vsyncpa [#allocation4], 0  ;;  %s519_s21 = smov [#allocation2]  }
   0x2   :  { %s20_s22 = sshll.u32 %s519_s21, 4  ;;  %s21_s22 = int_to_ptr.vmem [resolvable:$true] %s20_s22 }
   0x3   :  { %s483_s23 = scalar_lea.vmem %s21_s22, 1280  ;;  %p488_p1 = scmp.lt.s32.totalorder %s21_s22, %s21_s22 }
   0x4   :  { %p484_p0 = scmp.ne.s32.totalorder %s21_s22, %s483_s23  ;;  %p489_p2 = scmp.lt.s32.totalorder %s483_s23, %s483_s23 }
   0x6   :  { %p490_p3 = por %p489_p2, %p488_p1 }
   0x8   :  { %p491_p4 = pnand %p490_p3, %p484_p0 }
   0xa   :  { %494 = shalt.err (!%p491_p4)
}
   0xb   :  { %s520_s24 = smov 128   ;;  %s521_s25 = smov 8  }
   0xc   :  { %26 = dma.hbm_to_vmem [thread:$0]  %s720_s1, 1280, %s21_s22, [#allocation3], %s520_s24, %s520_s24, %s521_s25  }
   0xd   :  { %515 = dma.done.wait [#allocation3], 1280  }
   0xe   :  { %516 = vsyncadd [#allocation3], 4294966016  ;;  %v522_v0 = vmov 0.0   ;;  %vm523_vm0 = vmmov 0   ;;  %v48_v1 = vld [vmem:[#allocation2 + $0x48] sm:$0xff]  ;;  %v47_v2 = vld [vmem:[#allocation2 + $0x40] sm:$0xff] }
   0xf   :  { %376 = vmatprep.subr.mxu0 %v522_v0  ;;  %396 = vmatprep.mubr.msk.f32.mxu0 %vm523_vm0, %v522_v0  ;;  %v46_v3 = vld [vmem:[#allocation2 + $0x38] sm:$0xff]  ;;  %v45_v5 = vld [vmem:[#allocation2 + $0x30] sm:$0xff]  ;;  %v144_v7 = vld [vmem:[%s722_s3 + $0x68] sm:$0xff]  ;;  %vm56_vm1 = vcmask 654336   ;;  %s524_s18 = smov [#allocation5]   ;;  %vm311_vm2 = vcmask 195584  }
  0x10   :  { %399 = vmatprep.subr.mxu1 %v522_v0  ;;  %431 = vmatprep.mubr.msk.f32.mxu1 %vm523_vm0, %v522_v0  ;;  %v146_v4 = vld [vmem:[%s722_s3 + $0x78] sm:$0xff]  ;;  %v145_v6 = vld [vmem:[%s722_s3 + $0x70] sm:$0xff]  ;;  %v44_v8 = vld [vmem:[#allocation2 + $0x28] sm:$0xff]  ;;  %s319_s19 = sshll.u32 %s524_s18, 4  ;;  %s320_s19 = int_to_ptr.vmem [resolvable:$true] %s319_s19 }
  0x11   :  { %377 = vmatpush3.msra.mxu0 %v48_v1  ;;  %400 = vmatpush3.msra.mxu1 %v146_v4  ;;  %v143_v9 = vld [vmem:[%s722_s3 + $0x60] sm:$0xff]  ;;  %v142_v11 = vld [vmem:[%s722_s3 + $0x58] sm:$0xff]  ;;  %v141_v13 = vld [vmem:[%s722_s3 + $0x50] sm:$0xff]  ;;  %s495_s20 = scalar_lea.vmem %s320_s19, 128  ;;  %p500_p6 = scmp.lt.s32.totalorder %s320_s19, %s320_s19 }
  0x12   :  { %378 = vmatprep.subr.mxu0 %v522_v0  ;;  %401 = vmatprep.subr.mxu1 %v522_v0  ;;  %v43_v10 = vld [vmem:[#allocation2 + $0x20] sm:$0xff]  ;;  %v42_v12 = vld [vmem:[#allocation2 + $0x18] sm:$0xff]  ;;  %v41_v14 = vld [vmem:[#allocation2 + $0x10] sm:$0xff]  ;;  %p496_p5 = scmp.ne.s32.totalorder %s320_s19, %s495_s20  ;;  %p501_p7 = scmp.lt.s32.totalorder %s495_s20, %s495_s20 }
  0x13   :  { %379 = vmatpush3.msra.mxu0 %v47_v2  ;;  %402 = vmatpush3.msra.mxu1 %v145_v6  ;;  %v140_v15 = vld [vmem:[%s722_s3 + $0x48] sm:$0xff]  ;;  %v139_v17 = vld [vmem:[%s722_s3 + $0x40] sm:$0xff]  ;;  %v138_v20 = vld [vmem:[%s722_s3 + $0x38] sm:$0xff] }
  0x14   :  { %380 = vmatprep.subr.mxu0 %v522_v0  ;;  %403 = vmatprep.subr.mxu1 %v522_v0  ;;  %v40_v16 = vld [vmem:[#allocation2 + $0x8] sm:$0xff]  ;;  %v39_v18 = vld [vmem:[#allocation2] sm:$0xff]  ;;  %v137_v21 = vld [vmem:[%s722_s3 + $0x30] sm:$0xff]  ;;  %p502_p8 = por %p501_p7, %p500_p6 }
  0x15   :  { %381 = vmatpush3.msra.mxu0 %v46_v3  ;;  %404 = vmatpush3.msra.mxu1 %v144_v7  ;;  %v38_v19 = vld [vmem:[%s719_s0] sm:$0xff]  ;;  %v136_v22 = vld [vmem:[%s722_s3 + $0x28] sm:$0xff]  ;;  %v134_v24 = vld [vmem:[%s722_s3 + $0x18] sm:$0xff] }
  0x16   :  { %382 = vmatprep.subr.mxu0 %v522_v0  ;;  %405 = vmatprep.subr.mxu1 %v522_v0  ;;  %v135_v23 = vld [vmem:[%s722_s3 + $0x20] sm:$0xff]  ;;  %v133_v25 = vld [vmem:[%s722_s3 + $0x10] sm:$0xff]  ;;  %v132_v26 = vld [vmem:[%s722_s3 + $0x8] sm:$0xff]  ;;  %p503_p9 = pnand %p502_p8, %p496_p5 }
  0x17   :  { %383 = vmatpush3.msra.mxu0 %v45_v5  ;;  %406 = vmatpush3.msra.mxu1 %v143_v9  ;;  %v131_v27 = vld [vmem:[%s722_s3] sm:$0xff]  ;;  %v240_v28 = vld [vmem:[%s724_s5 + $0x78] sm:$0xff]  ;;  %v239_v29 = vld [vmem:[%s724_s5 + $0x70] sm:$0xff] }
  0x18   :  { %384 = vmatprep.subr.mxu0 %v522_v0  ;;  %407 = vmatprep.subr.mxu1 %v522_v0  ;;  %v238_v30 = vld [vmem:[%s724_s5 + $0x68] sm:$0xff]  ;;  %v237_v31 = vld [vmem:[%s724_s5 + $0x60] sm:$0xff]  ;;  %v236_v32 = vld [vmem:[%s724_s5 + $0x58] sm:$0xff] }
  0x19   :  { %385 = vmatpush3.msra.mxu0 %v44_v8  ;;  %408 = vmatpush3.msra.mxu1 %v142_v11  ;;  %v235_v33 = vld [vmem:[%s724_s5 + $0x50] sm:$0xff]  ;;  %v234_v34 = vld [vmem:[%s724_s5 + $0x48] sm:$0xff]  ;;  %v233_v35 = vld [vmem:[%s724_s5 + $0x40] sm:$0xff] }
  0x1a   :  { %386 = vmatprep.subr.mxu0 %v522_v0  ;;  %409 = vmatprep.subr.mxu1 %v522_v0  ;;  %v232_v36 = vld [vmem:[%s724_s5 + $0x38] sm:$0xff]  ;;  %v231_v37 = vld [vmem:[%s724_s5 + $0x30] sm:$0xff]  ;;  %v230_v38 = vld [vmem:[%s724_s5 + $0x28] sm:$0xff] }
  0x1b   :  { %387 = vmatpush3.msra.mxu0 %v43_v10  ;;  %410 = vmatpush3.msra.mxu1 %v141_v13  ;;  %v229_v39 = vld [vmem:[%s724_s5 + $0x20] sm:$0xff]  ;;  %v228_v40 = vld [vmem:[%s724_s5 + $0x18] sm:$0xff]  ;;  %v227_v46 = vld [vmem:[%s724_s5 + $0x10] sm:$0xff] }
  0x1c   :  { %388 = vmatprep.subr.mxu0 %v522_v0  ;;  %411 = vmatprep.subr.mxu1 %v522_v0  ;;  %v328_v41 = vld [vmem:[%s721_s2] ss:$0 sm:$0xff]  ;;  %v226_v47 = vld [vmem:[%s724_s5 + $0x8] sm:$0xff] }
  0x1d   :  { %389 = vmatpush3.msra.mxu0 %v42_v12  ;;  %412 = vmatpush3.msra.mxu1 %v140_v15  ;;  %v225_v48 = vld [vmem:[%s724_s5] sm:$0xff] }
  0x1e   :  { %390 = vmatprep.subr.mxu0 %v522_v0  ;;  %413 = vmatprep.subr.mxu1 %v522_v0  ;;  %v330_v49 = vld [vmem:[%s723_s4] ss:$0 sm:$0xff] }
  0x1f   :  { %391 = vmatpush3.msra.mxu0 %v41_v14  ;;  %414 = vmatpush3.msra.mxu1 %v139_v17 }
  0x20   :  { %392 = vmatprep.subr.mxu0 %v522_v0  ;;  %415 = vmatprep.subr.mxu1 %v522_v0 }
  0x21   :  { %393 = vmatpush3.msra.mxu0 %v40_v16  ;;  %416 = vmatpush3.msra.mxu1 %v138_v20 }
  0x22   :  { %394 = vmatprep.subr.mxu0 %v522_v0  ;;  %417 = vmatprep.subr.mxu1 %v522_v0 }
  0x23   :  { %395 = vmatpush3.msra.mxu0 %v39_v18  ;;  %418 = vmatpush3.msra.mxu1 %v137_v21 }
  0x24   :  { %397 = vmatmul.mubr.msk.f32.vlgmr.msra.gmra.mxu0 %vm56_vm1, %v38_v19  ;;  %434 = vmatprep.subr.mxu0 %v522_v0 }
  0x25   :  { %466 = vmatprep.mubr.msk.f32.mxu0 %vm523_vm0, %v522_v0  ;;  %419 = vmatprep.subr.mxu1 %v522_v0 }
  0x26   :  { %420 = vmatpush3.msra.mxu1 %v136_v22  ;;  %435 = vmatpush3.msra.mxu0 %v240_v28 }
  0x27   :  { %421 = vmatprep.subr.mxu1 %v522_v0  ;;  %436 = vmatprep.subr.mxu0 %v522_v0 }
  0x28   :  { %422 = vmatpush3.msra.mxu1 %v135_v23  ;;  %437 = vmatpush3.msra.mxu0 %v239_v29 }
  0x29   :  { %423 = vmatprep.subr.mxu1 %v522_v0  ;;  %438 = vmatprep.subr.mxu0 %v522_v0 }
  0x2a   :  { %424 = vmatpush3.msra.mxu1 %v134_v24  ;;  %439 = vmatpush3.msra.mxu0 %v238_v30 }
  0x2b   :  { %425 = vmatprep.subr.mxu1 %v522_v0  ;;  %440 = vmatprep.subr.mxu0 %v522_v0 }
  0x2c   :  { %426 = vmatpush3.msra.mxu1 %v133_v25  ;;  %441 = vmatpush3.msra.mxu0 %v237_v31 }
  0x2d   :  { %427 = vmatprep.subr.mxu1 %v522_v0  ;;  %442 = vmatprep.subr.mxu0 %v522_v0 }
  0x2e   :  { %428 = vmatpush3.msra.mxu1 %v132_v26  ;;  %443 = vmatpush3.msra.mxu0 %v236_v32 }
  0x2f   :  { %429 = vmatprep.subr.mxu1 %v522_v0  ;;  %444 = vmatprep.subr.mxu0 %v522_v0 }
  0x30   :  { %430 = vmatpush3.msra.mxu1 %v131_v27  ;;  %445 = vmatpush3.msra.mxu0 %v235_v33 }
  0x31   :  { %446 = vmatprep.subr.mxu0 %v522_v0 }
  0x32   :  { %447 = vmatpush3.msra.mxu0 %v234_v34 }
  0x33   :  { %448 = vmatprep.subr.mxu0 %v522_v0 }
  0x34   :  { %449 = vmatpush3.msra.mxu0 %v233_v35 }
  0x35   :  { %450 = vmatprep.subr.mxu0 %v522_v0 }
  0x36   :  { %451 = vmatpush3.msra.mxu0 %v232_v36 }
  0x37   :  { %452 = vmatprep.subr.mxu0 %v522_v0 }
  0x38   :  { %453 = vmatpush3.msra.mxu0 %v231_v37 }
  0x39   :  { %454 = vmatprep.subr.mxu0 %v522_v0 }
  0x3a   :  { %455 = vmatpush3.msra.mxu0 %v230_v38 }
  0x3b   :  { %456 = vmatprep.subr.mxu0 %v522_v0 }
  0x3c   :  { %457 = vmatpush3.msra.mxu0 %v229_v39 }
  0x3d   :  { %458 = vmatprep.subr.mxu0 %v522_v0 }
  0x3e   :  { %459 = vmatpush3.msra.mxu0 %v228_v40 }
  0x3f   :  { %460 = vmatprep.subr.mxu0 %v522_v0 }
  0x40   :  { %461 = vmatpush3.msra.mxu0 %v227_v46 }
  0x41   :  { %462 = vmatprep.subr.mxu0 %v522_v0 }
  0x42   :  { %463 = vmatpush3.msra.mxu0 %v226_v47 }
  0x43   :  { %464 = vmatprep.subr.mxu0 %v522_v0 }
  0x44   :  { %465 = vmatpush3.msra.mxu0 %v225_v48 }
  0xe4   :  { %v126_v42 = vpop.f32.mrf.mxu0 }
  0xe5   :  { %v127_v43 = vadd.f32 %v328_v41, %v126_v42 }
  0xe6   :  { %v398_v44 = vpop.f32.mrf.mxu0 }
  0xe7   :  { %v130_v45 = vmax.f32 %v127_v43, 0.0 }
  0xe9   :  { %432 = vmatmul.mubr.f32.vlgmr.msra.gmra.mxu1 %v130_v45 }
 0x1a9   :  { %v220_v50 = vpop.f32.mrf.mxu1 }
 0x1aa   :  { %v221_v51 = vadd.f32 %v330_v49, %v220_v50 }
 0x1ab   :  { %v433_v52 = vpop.f32.mrf.mxu1 }
 0x1ac   :  { %v224_v53 = vmax.f32 %v221_v51, 0.0 }
 0x1ae   :  { %467 = vmatmul.mubr.f32.vlgmr.msra.gmra.mxu0 %v224_v53 }
 0x26e   :  { %v307_v54 = vpop.f32.mrf.mxu0 }
 0x26f   :  { %312 = vst.msk [vmem:[#allocation5] sm:$0xff] %vm311_vm2, %v307_v54 }
 0x270   :  { %v468_v55 = vpop.f32.mrf.mxu0 }
 0x271   :  { %506 = shalt.err (!%p503_p9)
}
 0x272   :  { %322 = dma.vmem_to_hbm [thread:$0]  %s320_s19, 128, %s725_s6, [#allocation4]  }
 0x273   :  { %517 = dma.done.wait [#allocation4], 128  }
 0x274   :  { %518 = vsyncadd [#allocation4], 4294967168 }
 0x275   :  { %326 = vsyncpa [#allocation3], 1 }
 0x276   :  { %327 = vsyncpa [#allocation4], 1 }

</bundles_post_ra>
